<compile_context>
chip_gen: v7x
topology: tpu7x:2x2x1
jax: 0.10.0
libtpu: 0.0.40
codegen_flags: <defaults>
</compile_context>

<pallas_src>
import math

import jax
import jax.numpy as jnp
from jax.experimental import pallas as pl
from jax.experimental.pallas import tpu as pltpu

LOG_STD_MIN = -20.0
LOG_STD_MAX = 2.0

_TB_CAP = 2048  # VMEM use even at tb=2048 is < 1 MiB; far under all limits.


def _round_up(x, m):
    return ((x + m - 1) // m) * m


def _cdiv(a, b):
    return (a + b - 1) // b


def _policy_kernel(s_ref, w1_ref, b1_ref, w2_ref, b2_ref, wh_ref, bh_ref,
                   lo_ref, hi_ref, out_ref):
    # Feature-major: activations are (features, TB), batch on the 128-lane axis.
    # x1 = relu(W1 @ s + b1)                 (hidden, TB)
    x = jnp.dot(w1_ref[...], s_ref[...], preferred_element_type=jnp.float32)
    x = jnp.maximum(x + b1_ref[...], 0.0)
    # x2 = relu(W2 @ x1 + b2)                (hidden, TB)
    x = jnp.dot(w2_ref[...], x.astype(jnp.bfloat16),
                preferred_element_type=jnp.float32)
    x = jnp.maximum(x + b2_ref[...], 0.0)
    # Fused heads: h = [Wm; Wl] @ x2 + [bm; bl]   -> (2*action_dim, TB)
    h = jnp.dot(wh_ref[...], x.astype(jnp.bfloat16),
                preferred_element_type=jnp.float32)
    h = h + bh_ref[...]
    # Per-row clamp bounds: (-inf, +inf) for mean rows, (-20, 2) for log_std.
    out_ref[...] = jnp.minimum(jnp.maximum(h, lo_ref[...]), hi_ref[...])


def _select_tb(B):
    # Even number of grid steps (keeps both v7x TensorCores busy), tile a
    # multiple of 128 lanes, padding kept at roughly < one tile.
    n_steps = 2 * _cdiv(B, 2 * _TB_CAP)
    return max(128, _round_up(_cdiv(B, n_steps), 128))


def policy_forward(state, params, tb=None):
    """state: (B, state_dim) f32 (PyTorch convention).

    params: PyTorch-native (out, in) bf16 weights w1/w2/wh, f32 column biases
    b1/b2/bh of shape (out, 1), and f32 clamp-bound columns lo/hi of shape
    (2*action_dim, 1).  Returns (mean, log_std), each (B, action_dim) f32.
    """
    B, state_dim = state.shape
    two_a = params["wh"].shape[0]
    action_dim = two_a // 2
    hidden = params["w1"].shape[0]
    assert params["w1"].shape == (hidden, state_dim)

    if tb is None:
        tb = _select_tb(B)
    else:
        tb = max(128, _round_up(tb, 128))

    Bp = _round_up(B, tb)
    if (Bp // tb) % 2:          # keep the grid even for v7x megacore
        Bp += tb

    # Feature-major, bf16, lane-padded state: (state_dim, Bp).
    state_t = state.astype(jnp.bfloat16).T
    if Bp != B:
        state_t = jnp.pad(state_t, ((0, 0), (0, Bp - B)))

    grid = (Bp // tb,)

    def lane_spec(rows):
        return pl.BlockSpec((rows, tb), lambda i: (0, i))

    def resident(arr):
        # Grid-invariant: fetched once, resident in VMEM across all steps.
        return pl.BlockSpec(arr.shape, lambda i: (0, 0))

    out = pl.pallas_call(
        _policy_kernel,
        out_shape=jax.ShapeDtypeStruct((two_a, Bp), jnp.float32),
        grid=grid,
        in_specs=[lane_spec(state_dim),
                  resident(params["w1"]), resident(params["b1"]),
                  resident(params["w2"]), resident(params["b2"]),
                  resident(params["wh"]), resident(params["bh"]),
                  resident(params["lo"]), resident(params["hi"])],
        out_specs=lane_spec(two_a),
        compiler_params=pltpu.CompilerParams(
            dimension_semantics=("parallel",)),
    )(state_t, params["w1"], params["b1"], params["w2"], params["b2"],
      params["wh"], params["bh"], params["lo"], params["hi"])

    out = out[:, :B]
    mean = out[:action_dim, :].T
    log_std = out[action_dim:, :].T
    return mean, log_std


def xavier_uniform(key, out_features, in_features, gain=1.0):
    # Matches torch.nn.init.xavier_uniform_ on a (out, in) Linear weight.
    limit = gain * math.sqrt(6.0 / (in_features + out_features))
    return jax.random.uniform(key, (out_features, in_features), jnp.float32,
                              -limit, limit)


def init_params(key, state_dim, action_dim, hidden_dim):
    k1, k2, k3, k4 = jax.random.split(key, 4)
    wm = xavier_uniform(k3, action_dim, hidden_dim)
    wl = xavier_uniform(k4, action_dim, hidden_dim)
    neg_inf = jnp.full((action_dim, 1), -jnp.inf, jnp.float32)
    pos_inf = jnp.full((action_dim, 1), jnp.inf, jnp.float32)
    return {
        # bf16 operand storage (f32 accumulation happens in the kernel).
        "w1": xavier_uniform(k1, hidden_dim, state_dim).astype(jnp.bfloat16),
        "b1": jnp.zeros((hidden_dim, 1), jnp.float32),
        "w2": xavier_uniform(k2, hidden_dim, hidden_dim).astype(jnp.bfloat16),
        "b2": jnp.zeros((hidden_dim, 1), jnp.float32),
        # Fused mean||log_std head: rows [0,A) = mean, rows [A,2A) = log_std.
        "wh": jnp.concatenate([wm, wl], axis=0).astype(jnp.bfloat16),
        "bh": jnp.zeros((2 * action_dim, 1), jnp.float32),
        # Per-row clamp bounds (no-op on mean rows).
        "lo": jnp.concatenate(
            [neg_inf, jnp.full((action_dim, 1), LOG_STD_MIN, jnp.float32)], 0),
        "hi": jnp.concatenate(
            [pos_inf, jnp.full((action_dim, 1), LOG_STD_MAX, jnp.float32)], 0),
    }


if __name__ == "__main__":
    # Shapes consistent with the module: state_dim=16, action_dim=4,
    # actor_hidden_dim=32.  Batch=64 -> tb=128, Bp=256, grid=(2,) so the
    # even-grid / pipelined path is exercised; production batches in the
    # thousands amortize per-call overhead far better.
    B, STATE_DIM, ACTION_DIM, HIDDEN = 64, 16, 4, 32

    key = jax.random.PRNGKey(0)
    pkey, skey = jax.random.split(key)
    params = init_params(pkey, STATE_DIM, ACTION_DIM, HIDDEN)
    state = jax.random.normal(skey, (B, STATE_DIM), jnp.float32)

    mean, log_std = policy_forward(state, params)
    jax.block_until_ready((mean, log_std))

    # Pure-JAX reference of the same math (bf16 operands, f32 accumulation).
    def ref(s, p):
        sb = s.astype(jnp.bfloat16)
        x = jnp.maximum(
            jnp.dot(sb, p["w1"].T, preferred_element_type=jnp.float32)
            + p["b1"].T, 0.0)
        x = jnp.maximum(
            jnp.dot(x.astype(jnp.bfloat16), p["w2"].T,
                    preferred_element_type=jnp.float32) + p["b2"].T, 0.0)
        h = jnp.dot(x.astype(jnp.bfloat16), p["wh"].T,
                    preferred_element_type=jnp.float32) + p["bh"].T
        a = p["wh"].shape[0] // 2
        return h[:, :a], jnp.clip(h[:, a:], LOG_STD_MIN, LOG_STD_MAX)

    m_ref, ls_ref = ref(state, params)
    assert mean.shape == (B, ACTION_DIM) and log_std.shape == (B, ACTION_DIM)
    assert jnp.allclose(mean, m_ref, atol=1e-3, rtol=1e-3), "mean mismatch"
    assert jnp.allclose(log_std, ls_ref, atol=1e-3, rtol=1e-3), "log_std mismatch"

    # TODO(synk): the stochastic `sample()` method (rsample + sigmoid squash +
    # log_prob correction) is not part of forward(); it stays in plain JAX.
    print("KERNEL_OK")
</pallas_src>

<mosaic_0001>
module attributes {stable_mosaic.version = 11 : i64} {
  func.func @_policy_kernel(%arg0: i32, %arg1: memref<16x128xbf16, #tpu.memory_space<vmem>>, %arg2: memref<32x16xbf16, #tpu.memory_space<vmem>>, %arg3: memref<32x1xf32, #tpu.memory_space<vmem>>, %arg4: memref<32x32xbf16, #tpu.memory_space<vmem>>, %arg5: memref<32x1xf32, #tpu.memory_space<vmem>>, %arg6: memref<8x32xbf16, #tpu.memory_space<vmem>>, %arg7: memref<8x1xf32, #tpu.memory_space<vmem>>, %arg8: memref<8x1xf32, #tpu.memory_space<vmem>>, %arg9: memref<8x1xf32, #tpu.memory_space<vmem>>, %arg10: memref<8x128xf32, #tpu.memory_space<vmem>>) attributes {dimension_semantics = [#tpu.dimension_semantics<parallel>], iteration_bounds = array<i64: 2>, scalar_prefetch = 0 : i64, scratch_operands = 0 : i64, tpu.core_type = #tpu.core_type<tc>, window_params = [{transform_indices = @transform_0, window_bounds = array<i64: 16, 128>}, {pipeline_mode = #tpu.pipeline_mode<synchronous>, transform_indices = @transform_1, window_bounds = array<i64: 32, 16>}, {pipeline_mode = #tpu.pipeline_mode<synchronous>, transform_indices = @transform_2, window_bounds = array<i64: 32, 1>}, {pipeline_mode = #tpu.pipeline_mode<synchronous>, transform_indices = @transform_3, window_bounds = array<i64: 32, 32>}, {pipeline_mode = #tpu.pipeline_mode<synchronous>, transform_indices = @transform_4, window_bounds = array<i64: 32, 1>}, {pipeline_mode = #tpu.pipeline_mode<synchronous>, transform_indices = @transform_5, window_bounds = array<i64: 8, 32>}, {pipeline_mode = #tpu.pipeline_mode<synchronous>, transform_indices = @transform_6, window_bounds = array<i64: 8, 1>}, {pipeline_mode = #tpu.pipeline_mode<synchronous>, transform_indices = @transform_7, window_bounds = array<i64: 8, 1>}, {pipeline_mode = #tpu.pipeline_mode<synchronous>, transform_indices = @transform_8, window_bounds = array<i64: 8, 1>}, {transform_indices = @transform_9, window_bounds = array<i64: 8, 128>}]} {
    %c0 = arith.constant 0 : index
    %c0_0 = arith.constant 0 : index
    %0 = vector.load %arg2[%c0, %c0_0] : memref<32x16xbf16, #tpu.memory_space<vmem>>, vector<32x16xbf16>
    %c0_1 = arith.constant 0 : index
    %c0_2 = arith.constant 0 : index
    %1 = vector.load %arg1[%c0_1, %c0_2] : memref<16x128xbf16, #tpu.memory_space<vmem>>, vector<16x128xbf16>
    %cst = arith.constant dense<0.000000e+00> : vector<32x128xf32>
    %2 = tpu.matmul %0, %1, %cst {dimension_numbers = #tpu.dot_dimension_numbers<[1], [0], [0], [1], [0, 0, 1, 1], [], []>} : vector<32x16xbf16>, vector<16x128xbf16>, vector<32x128xf32> -> vector<32x128xf32>
    %c0_3 = arith.constant 0 : index
    %c0_4 = arith.constant 0 : index
    %3 = vector.load %arg3[%c0_3, %c0_4] : memref<32x1xf32, #tpu.memory_space<vmem>>, vector<32x1xf32>
    %4 = vector.broadcast %3 : vector<32x1xf32> to vector<32x128xf32>
    %5 = arith.addf %2, %4 : vector<32x128xf32>
    %cst_5 = arith.constant 0.000000e+00 : f32
    %6 = vector.broadcast %cst_5 : f32 to vector<32x128xf32>
    %7 = arith.maximumf %5, %6 : vector<32x128xf32>
    %c0_6 = arith.constant 0 : index
    %c0_7 = arith.constant 0 : index
    %8 = vector.load %arg4[%c0_6, %c0_7] : memref<32x32xbf16, #tpu.memory_space<vmem>>, vector<32x32xbf16>
    %9 = arith.truncf %7 : vector<32x128xf32> to vector<32x128xbf16>
    %cst_8 = arith.constant dense<0.000000e+00> : vector<32x128xf32>
    %10 = tpu.matmul %8, %9, %cst_8 {dimension_numbers = #tpu.dot_dimension_numbers<[1], [0], [0], [1], [0, 0, 1, 1], [], []>} : vector<32x32xbf16>, vector<32x128xbf16>, vector<32x128xf32> -> vector<32x128xf32>
    %c0_9 = arith.constant 0 : index
    %c0_10 = arith.constant 0 : index
    %11 = vector.load %arg5[%c0_9, %c0_10] : memref<32x1xf32, #tpu.memory_space<vmem>>, vector<32x1xf32>
    %12 = vector.broadcast %11 : vector<32x1xf32> to vector<32x128xf32>
    %13 = arith.addf %10, %12 : vector<32x128xf32>
    %cst_11 = arith.constant 0.000000e+00 : f32
    %14 = vector.broadcast %cst_11 : f32 to vector<32x128xf32>
    %15 = arith.maximumf %13, %14 : vector<32x128xf32>
    %c0_12 = arith.constant 0 : index
    %c0_13 = arith.constant 0 : index
    %16 = vector.load %arg6[%c0_12, %c0_13] : memref<8x32xbf16, #tpu.memory_space<vmem>>, vector<8x32xbf16>
    %17 = arith.truncf %15 : vector<32x128xf32> to vector<32x128xbf16>
    %cst_14 = arith.constant dense<0.000000e+00> : vector<8x128xf32>
    %18 = tpu.matmul %16, %17, %cst_14 {dimension_numbers = #tpu.dot_dimension_numbers<[1], [0], [0], [1], [0, 0, 1, 1], [], []>} : vector<8x32xbf16>, vector<32x128xbf16>, vector<8x128xf32> -> vector<8x128xf32>
    %c0_15 = arith.constant 0 : index
    %c0_16 = arith.constant 0 : index
    %19 = vector.load %arg7[%c0_15, %c0_16] : memref<8x1xf32, #tpu.memory_space<vmem>>, vector<8x1xf32>
    %20 = vector.broadcast %19 : vector<8x1xf32> to vector<8x128xf32>
    %21 = arith.addf %18, %20 : vector<8x128xf32>
    %c0_17 = arith.constant 0 : index
    %c0_18 = arith.constant 0 : index
    %22 = vector.load %arg8[%c0_17, %c0_18] : memref<8x1xf32, #tpu.memory_space<vmem>>, vector<8x1xf32>
    %23 = vector.broadcast %22 : vector<8x1xf32> to vector<8x128xf32>
    %24 = arith.maximumf %21, %23 : vector<8x128xf32>
    %c0_19 = arith.constant 0 : index
    %c0_20 = arith.constant 0 : index
    %25 = vector.load %arg9[%c0_19, %c0_20] : memref<8x1xf32, #tpu.memory_space<vmem>>, vector<8x1xf32>
    %26 = vector.broadcast %25 : vector<8x1xf32> to vector<8x128xf32>
    %27 = arith.minimumf %24, %26 : vector<8x128xf32>
    %c0_21 = arith.constant 0 : index
    %c0_22 = arith.constant 0 : index
    %28 = vector.load %arg10[%c0_21, %c0_22] : memref<8x128xf32, #tpu.memory_space<vmem>>, vector<8x128xf32>
    tpu.vector_store %arg10[%c0_21, %c0_22], %27 {strides = array<i32>} : memref<8x128xf32, #tpu.memory_space<vmem>>, vector<8x128xf32>,
    return
  }
  func.func @transform_0(%arg0: i32) -> (i32, i32) {
    %c0_i32 = arith.constant 0 : i32
    %c0_i32_0 = arith.constant 0 : i32
    return %c0_i32, %arg0 : i32, i32
  }
  func.func @transform_1(%arg0: i32) -> (i32, i32) {
    %c0_i32 = arith.constant 0 : i32
    %c0_i32_0 = arith.constant 0 : i32
    %c0_i32_1 = arith.constant 0 : i32
    return %c0_i32, %c0_i32_0 : i32, i32
  }
  func.func @transform_2(%arg0: i32) -> (i32, i32) {
    %c0_i32 = arith.constant 0 : i32
    %c0_i32_0 = arith.constant 0 : i32
    %c0_i32_1 = arith.constant 0 : i32
    return %c0_i32, %c0_i32_0 : i32, i32
  }
  func.func @transform_3(%arg0: i32) -> (i32, i32) {
    %c0_i32 = arith.constant 0 : i32
    %c0_i32_0 = arith.constant 0 : i32
    %c0_i32_1 = arith.constant 0 : i32
    return %c0_i32, %c0_i32_0 : i32, i32
  }
  func.func @transform_4(%arg0: i32) -> (i32, i32) {
    %c0_i32 = arith.constant 0 : i32
    %c0_i32_0 = arith.constant 0 : i32
    %c0_i32_1 = arith.constant 0 : i32
    return %c0_i32, %c0_i32_0 : i32, i32
  }
  func.func @transform_5(%arg0: i32) -> (i32, i32) {
    %c0_i32 = arith.constant 0 : i32
    %c0_i32_0 = arith.constant 0 : i32
    %c0_i32_1 = arith.constant 0 : i32
    return %c0_i32, %c0_i32_0 : i32, i32
  }
  func.func @transform_6(%arg0: i32) -> (i32, i32) {
    %c0_i32 = arith.constant 0 : i32
    %c0_i32_0 = arith.constant 0 : i32
    %c0_i32_1 = arith.constant 0 : i32
    return %c0_i32, %c0_i32_0 : i32, i32
  }
  func.func @transform_7(%arg0: i32) -> (i32, i32) {
    %c0_i32 = arith.constant 0 : i32
    %c0_i32_0 = arith.constant 0 : i32
    %c0_i32_1 = arith.constant 0 : i32
    return %c0_i32, %c0_i32_0 : i32, i32
  }
  func.func @transform_8(%arg0: i32) -> (i32, i32) {
    %c0_i32 = arith.constant 0 : i32
    %c0_i32_0 = arith.constant 0 : i32
    %c0_i32_1 = arith.constant 0 : i32
    return %c0_i32, %c0_i32_0 : i32, i32
  }
  func.func @transform_9(%arg0: i32) -> (i32, i32) {
    %c0_i32 = arith.constant 0 : i32
    %c0_i32_0 = arith.constant 0 : i32
    return %c0_i32, %arg0 : i32, i32
  }
}

</mosaic_0001>

<bundles_post_ra>
// kernel: tpu_custom_call.1
= control target key start
LH: loop header
LB: loop body
LE: loop exit
PB: predicated region body
PF: predicated region fallthrough
CT: control target
= control target key end

     0   :  { %14 = vsyncpa [#allocation4], 0  ;;  %s1116_s0 = inlined_call_operand.vmem [shape: bf16[16,256], index: 0, kind: input, shape index: {}]   ;;  %s1117_s1 = inlined_call_operand.vmem [shape: bf16[32,16], index: 1, kind: input, shape index: {}]   ;;  %s1118_s2 = inlined_call_operand.vmem [shape: f32[32,1], index: 2, kind: input, shape index: {}]   ;;  %s1119_s3 = inlined_call_operand.vmem [shape: bf16[32,32], index: 3, kind: input, shape index: {}]   ;;  %s1120_s4 = inlined_call_operand.vmem [shape: f32[32,1], index: 4, kind: input, shape index: {}]   ;;  %s1121_s5 = inlined_call_operand.vmem [shape: bf16[8,32], index: 5, kind: input, shape index: {}]   ;;  %s1122_s6 = inlined_call_operand.vmem [shape: f32[8,1], index: 6, kind: input, shape index: {}]   ;;  %s1123_s7 = inlined_call_operand.vmem [shape: f32[8,1], index: 7, kind: input, shape index: {}]   ;;  %s1124_s8 = inlined_call_operand.vmem [shape: f32[8,1], index: 8, kind: input, shape index: {}]   ;;  %s1125_s9 = inlined_call_operand.hbm [shape: f32[8,256], index: 9, kind: output, shape index: {}]  }
   0x1   :  { %16 = vsyncpa [#allocation4 + $0x1], 0  ;;  %s950_s30 = smov 0   ;;  %s952_s10 = smov 0  }
   0x2   :  { %s954_s11 = smov 0   ;;  %s956_s12 = smov 0  }
   0x3 LB: > { %s728_s13 = sadd.s32 4294967295, %s894_s12   ;;  %s729_s14 = sadd.s32 4294967294, %s894_s12   ;;  %s894_s12 = sphi %s956_s12, %s1131_s12   ;;  %s890_s11 = sphi %s954_s11, %s1130_s11   ;;  %s886_s10 = sphi %s952_s10, %s1129_s10   ;;  %s882_s30 = sphi %s950_s30, %s1128_s30  }
   0x4   : > { %s973_s15 = sadd.s32 1, %s894_s12   ;;  %s29_s16 = sadd.s32 1, %s890_s11 }
   0x5   : > { %s26_s17 = ssub.s32 %s894_s12, %s973_s15  ;;  %p36_p0 = scmp.ne.s32.totalorder %s890_s11, %s886_s10 }
   0x6   : > { %p27_p1 = scmp.eq.s32.totalorder %s26_s17, 0  ;;  %p37_p2 = scmp.eq.s32.totalorder %s894_s12, 0 }
   0x7   : > { %p234_p3 = scmp.eq.s32.totalorder %s728_s13, 1  ;;  %p239_p4 = scmp.ne.s32.totalorder %s886_s10, %s882_s30 }
   0x8   : > { %s986_s18 = scalar_select %p27_p1, %s890_s11, %s29_s16  }
   0x9   : > { %p38_p5 = por %p37_p2, %p36_p0  ;;  %p988_p6 = por %p234_p3, %p36_p0 }
   0xa   : > { %p240_p7 = scmp.eq.s32.totalorder %s729_s14, 1  ;;  %p731_p9 = scmp.ge.s32.totalorder %s894_s12, 2 }
   0xc   : > { %p992_p8 = por %p240_p7, %p239_p4  ;;  %280 = sbr.rel (%p731_p9) target bundleno = 26 (0x1a), region = 48 }
  0x13   : > { %283 = sbr.rel (!%p38_p5) target bundleno = 26 (0x1a), region = 52  ;;  %s285_s21 = sand.u32 (%p38_p5), 1, %s890_s11  }
  0x14   : > { %s733_s22 = sshll.u32 (%p38_p5), %s894_s12, 2  ;;  %s732_s23 = sshll.u32 (%p38_p5), %s285_s21, 3 }
  0x15   : > { %s289_s26 = scalar_lea.vmem (%p38_p5), %s1116_s0, %s733_s22  ;;  %s287_s27 = scalar_lea.vmem (%p38_p5), [#allocation2], %s732_s23 }
  0x16   : > { %v305_v0 = vld [vmem:[%s289_s26] sm:$0xf] (%p38_p5)  ;;  %v307_v1 = vld [vmem:[%s289_s26 + $0x8] sm:$0xf] (%p38_p5) }
  0x17   : > { %306 = vst [vmem:[%s287_s27] sm:$0xf] (%p38_p5), %v305_v0  ;;  %308 = vst [vmem:[%s287_s27 + $0x4] sm:$0xf] (%p38_p5), %v307_v1 }
  0x1a PF: > { %p734_p10 = scmp.ge.s32.totalorder %s894_s12, 1  ;;  %p334_p11 = scmp.lt.s32.totalorder %s894_s12, 3 }
  0x1c   : > { %p335_p12 = pnand %p734_p10, %p334_p11 }
  0x1d   : > { %s341_s28 = sand.u32 (!%p335_p12), 1, %s886_s10   ;;  %v828_v2 = vld [vmem:[%s1117_s1] sm:$0xff] (!%p335_p12)   ;;  %vm423_vm0 = vcmask (!%p335_p12), 130048   ;;  %v896_v5 = vmov (!%p335_p12), 0   ;;  %v385_v6 = vld [vmem:[%s1118_s2 + $0x10] sm:$0xff] (!%p335_p12)  ;;  %v829_v7 = vld [vmem:[%s1117_s1 + $0x8] sm:$0xff] (!%p335_p12)  }
  0x1e   : > { %338 = sbr.rel (%p335_p12) target bundleno = 726 (0x2d6), region = 93  ;;  %s1012_s16 = sshll.u32 (!%p335_p12), %s341_s28, 3  ;;  %763 = vmatprep.mubr.msk.bf16.mxu0 (!%p335_p12), %vm423_vm0, %v828_v2  ;;  %v383_v3 = vld [vmem:[%s1118_s2] sm:$0xff] (!%p335_p12)  ;;  %825 = vset.pattern.permute.xlu0 (!%p335_p12), %v896_v5  ;;  %v384_v8 = vld [vmem:[%s1118_s2 + $0x8] sm:$0xff] (!%p335_p12)  ;;  %v386_v9 = vld [vmem:[%s1118_s2 + $0x18] sm:$0xff] (!%p335_p12)  ;;  %vm523_vm1 = vcmask (!%p335_p12), 261120  }
  0x1f   : > { %s343_s22 = scalar_lea.vmem (!%p335_p12), [#allocation2], %s1012_s16  ;;  %826 = vset.pattern.permute.xlu1 (!%p335_p12), %v896_v5  ;;  %389 = vperm.xlu0 (!%p335_p12), %825, %v383_v3   ;;  %v489_v10 = vld [vmem:[%s1120_s4] sm:$0xff] (!%p335_p12)  ;;  %v490_v11 = vld [vmem:[%s1120_s4 + $0x8] sm:$0xff] (!%p335_p12)  ;;  %v491_v12 = vld [vmem:[%s1120_s4 + $0x10] sm:$0xff] (!%p335_p12)  ;;  %v897_v37 = vmov (!%p335_p12), 0.0   ;;  %vm898_vm2 = vmmov (!%p335_p12), 0  }
  0x20   : > { %v827_v4 = vld [vmem:[%s343_s22] sm:$0xff] (!%p335_p12)   ;;  %399 = vperm.xlu1 (!%p335_p12), %826, %v385_v6   ;;  %v492_v13 = vld [vmem:[%s1120_s4 + $0x18] sm:$0xff] (!%p335_p12)  ;;  %s748_s21 = sshll.u32 (!%p335_p12), %s728_s13, 7  ;;  %s375_s22 = scalar_lea.vmem (!%p335_p12), [#allocation3], %s1012_s16 }
  0x21   : > { %761 = vmatprep.subr.bf16.mxu0 (!%p335_p12), %v827_v4  ;;  %v586_v14 = vld [vmem:[%s1122_s6] sm:$0xff] (!%p335_p12)  ;;  %v831_v36 = vld [vmem:[%s1119_s3 + $0x8] sm:$0xff] (!%p335_p12)   ;;  %s664_s23 = sshll.u32 (!%p335_p12), %s375_s22, 4  ;;  %s1071_s26 = scalar_lea.hbm (!%p335_p12), %s1125_s9, %s748_s21  ;;  %s1073_s23 = int_to_ptr.vmem [resolvable:$true] %s664_s23 }
  0x22   : > { %762 = vmatpush3.bf16.msra.mxu0 (!%p335_p12), %v827_v4  ;;  %v635_v15 = vld [vmem:[%s1123_s7] sm:$0xff] (!%p335_p12)  ;;  %s651_s27 = scalar_lea.sflag (!%p335_p12), [#allocation4], %s341_s28  ;;  %s832_s13 = scalar_lea.vmem (!%p335_p12), %s1073_s23, 128 }
  0x23   : > { %394 = vperm.xlu0 (!%p335_p12), %825, %v384_v8   ;;  %v642_v16 = vld [vmem:[%s1124_s8] sm:$0xff] (!%p335_p12)  ;;  %775 = vmatprep.subr.bf16.mxu0 (!%p335_p12), %v897_v37  ;;  %p833_p13 = scmp.ne.s32.totalorder (!%p335_p12), %s1073_s23, %s832_s13  ;;  %s899_s16 = smov (!%p335_p12), [#allocation3]  }
  0x24   : > { %404 = vperm.xlu1 (!%p335_p12), %826, %v386_v9   ;;  %v830_v17 = vld [vmem:[%s1119_s3] sm:$0xff] (!%p335_p12)   ;;  %s836_s29 = sshll.u32 (!%p335_p12), %s899_s16, 4  ;;  %s837_s29 = int_to_ptr.vmem [resolvable:$false] %s836_s29 }
  0x25   : > { %764 = vmatmul.mubr.msk.bf16.vlgmr.msra.gmra.mrb[0].mxu0 %vm423_vm0, %v829_v7  ;;  %771 = vmatprep.mubr.msk.bf16.mxu1 %vm523_vm1, %v830_v17  ;;  %v583_v56 = vld [vmem:[%s1121_s5] sm:$0xf]  ;;  %p834_p0 = pnand %p833_p13, %p988_p6  ;;  %s838_s14 = scalar_lea.vmem %s837_s29, 256 }
  0x26   : > { %779 = vmatprep.mubr.msk.bf16.mxu0 %vm898_vm2, %v897_v37  ;;  %p839_p2 = scmp.lt.s32.totalorder %s1073_s23, %s837_s29  ;;  %p840_p3 = scmp.lt.s32.totalorder %s838_s14, %s832_s13 }
  0x27   : > { %495 = vperm.xlu0 %825, %v489_v10   ;;  %p835_p1 = pneg %p834_p0 }
  0x28   : > { %500 = vperm.xlu1 %826, %v490_v11   ;;  %p841_p4 = por %p840_p3, %p839_p2 }
  0x2a   : > { %p842_p5 = pnand %p841_p4, %p835_p1 }
  0x2b   : > { %505 = vperm.xlu0 %825, %v491_v12  }
  0x2c   : > { %510 = vperm.xlu1 %826, %v492_v13  }
  0x2f   : > { %589 = vperm.xlu0 %825, %v586_v14  }
  0x30   : > { %638 = vperm.xlu1 %826, %v635_v15  }
  0x33   : > { %645 = vperm.xlu0 %825, %v642_v16  }
  0x9e   : > { %v390_v19 = vpop.permute.xlu0 %389 }
  0x9f   : > { %v400_v18 = vpop.permute.xlu1 %399 }
  0xa2   : > { %v395_v26 = vpop.permute.xlu0 %394 }
  0xa3   : > { %v405_v23 = vpop.permute.xlu1 %404 }
  0xa6   : > { %v496_v38 = vpop.permute.xlu0 %495 }
  0xa7   : > { %v501_v39 = vpop.permute.xlu1 %500 }
  0xaa   : > { %v506_v40 = vpop.permute.xlu0 %505 }
  0xab   : > { %v511_v44 = vpop.permute.xlu1 %510 }
  0xae   : > { %v590_v57 = vpop.permute.xlu0 %589 }
  0xaf   : > { %v639_v61 = vpop.permute.xlu1 %638 }
  0xb2   : > { %v646_v1 = vpop.permute.xlu0 %645 }
  0xf8   : > { %v765_v20 = vpop.f32.mrb[0].mxu0 }
  0xf9   : > { %v473_v21 = vadd.f32 %v765_v20, %v400_v18  ;;  %v464_v22 = vpop.f32.mrb[1].mxu0 }
  0xfa   : > { %v465_v24 = vadd.f32 %v464_v22, %v390_v19  ;;  %v766_v25 = vpop.f32.mrb[2].mxu0 }
  0xfb   : > { %v476_v27 = vadd.f32 %v766_v25, %v405_v23  ;;  %v467_v28 = vpop.f32.mrb[3].mxu0  ;;  %v481_v30 = vmax.f32 %v473_v21, 0.0 }
  0xfc   : > { %v468_v29 = vadd.f32 %v467_v28, %v395_v26  ;;  %v479_v32 = vmax.f32 %v465_v24, 0.0 }
  0xfd   : > { %v482_v31 = vmax.f32 %v476_v27, 0.0 }
  0xfe   : > { %v480_v33 = vmax.f32 %v468_v29, 0.0 }
  0xff   : > { %v488_v34 = vpack.c.bf16 %v482_v31, %v481_v30 }
 0x100   : > { %v487_v35 = vpack.c.bf16 %v480_v33, %v479_v32 }
 0x102   : > { %767 = vmatprep.subr.bf16.mxu1 %v487_v35 }
 0x103   : > { %768 = vmatpush3.bf16.msra.mxu1 %v487_v35 }
 0x104   : > { %769 = vmatprep.subr.bf16.mxu1 %v488_v34 }
 0x107   : > { %770 = vmatpush3.bf16.msra.mxu1 %v488_v34 }
 0x10a   : > { %772 = vmatmul.mubr.msk.bf16.vlgmr.msra.gmra.mrb[0].mxu1 %vm523_vm1, %v831_v36 }
 0x1dd   : > { %v773_v41 = vpop.f32.mrb[0].mxu1 }
 0x1de   : > { %v573_v42 = vadd.f32 %v773_v41, %v506_v40  ;;  %v564_v43 = vpop.f32.mrb[1].mxu1 }
 0x1df   : > { %v565_v45 = vadd.f32 %v564_v43, %v496_v38  ;;  %v774_v46 = vpop.f32.mrb[2].mxu1 }
 0x1e0   : > { %v576_v47 = vadd.f32 %v774_v46, %v511_v44  ;;  %v567_v48 = vpop.f32.mrb[3].mxu1  ;;  %v581_v50 = vmax.f32 %v573_v42, 0.0 }
 0x1e1   : > { %v568_v49 = vadd.f32 %v567_v48, %v501_v39  ;;  %v579_v52 = vmax.f32 %v565_v45, 0.0 }
 0x1e2   : > { %v582_v51 = vmax.f32 %v576_v47, 0.0 }
 0x1e3   : > { %v580_v53 = vmax.f32 %v568_v49, 0.0 }
 0x1e4   : > { %v585_v54 = vpack.c.bf16 %v582_v51, %v581_v50 }
 0x1e5   : > { %v584_v55 = vpack.c.bf16 %v580_v53, %v579_v52 }
 0x1e7   : > { %776 = vmatpush3.bf16.msra.mxu0 %v584_v55 }
 0x1e8   : > { %777 = vmatprep.subr.bf16.mxu0 %v897_v37 }
 0x1eb   : > { %778 = vmatpush3.bf16.msra.mxu0 %v585_v54 }
 0x1ee   : > { %780 = vmatmul.mubr.msk.bf16.vlgmr.msra.gmra.mrb[4].mxu0 %vm523_vm1, %v583_v56 }
 0x2c1   : > { %v629_v58 = vpop.f32.mrb[4].mxu0 }
 0x2c2   : > { %v630_v59 = vadd.f32 %v629_v58, %v590_v57  ;;  %v781_v60 = vpop.f32.mrb[5].mxu0 }
 0x2c3   : > { %v632_v62 = vpop.f32.mrb[6].mxu0 }
 0x2c4   : > { %v641_v63 = vmax.f32 %v630_v59, %v639_v61  ;;  %v782_v0 = vpop.f32.mrb[7].mxu0 }
 0x2c6   : > { %v648_v2 = vmin.f32 %v641_v63, %v646_v1 }
 0x2c8   : > { %649 = vst [vmem:[%s375_s22] sm:$0xff] %v648_v2 }
 0x2c9   : > { %845 = shalt.err (!%p842_p5)
}
 0x2ca   : > { %s846_s28 = scalar_lea.hbm %s1071_s26, 128  ;;  %s850_s22 = scalar_lea.hbm %s1125_s9, 256 }
 0x2cb   : > { %p847_p7 = scmp.ne.s32.totalorder %s1071_s26, %s846_s28  ;;  %p851_p12 = scmp.lt.u32.totalorder %s1071_s26, %s1125_s9 }
 0x2cc   : > { %p852_p13 = scmp.lt.u32.totalorder %s850_s22, %s846_s28  ;;  %p854_p1 = scmp.lt.u32.totalorder %s846_s28, %s1071_s26 }
 0x2cd   : > { %p848_p10 = pnand %p847_p7, %p988_p6 }
 0x2ce   : > { %p853_p0 = por %p852_p13, %p851_p12 }
 0x2cf   : > { %p849_p11 = pneg %p848_p10 }
 0x2d0   : > { %p855_p2 = por %p854_p1, %p853_p0 }
 0x2d2   : > { %p856_p3 = pnand %p855_p2, %p849_p11 }
 0x2d4   : > { %859 = shalt.err (!%p856_p3)
}
 0x2d5   : > { %783 = dma.vmem_to_hbm [thread:$0]  (%p988_p6), %s1073_s23, 128, %s1071_s26, %s651_s27  }
 0x2d6 PF: > { %s676_s13 = sand.u32 1, %s882_s30   ;;  %p786_p4 = pnand %p731_p9, %p992_p8 }
 0x2d7   : > { %s677_s16 = scalar_lea.sflag [#allocation4], %s676_s13 }
 0x2d8   : > { %877 = dma.done.wait (!%p786_p4), %s677_s16, 128  }
 0x2d9   : > { %879 = vsyncadd (!%p786_p4), %s677_s16, 4294967168  ;;  %p19_p5 = scmp.ge.s32.totalorder %s973_s15, 4   ;;  %s1128_s30 = smov %s886_s10 }
 0x2da   : > { %s1129_s10 = smov %s890_s11  ;;  %s1130_s11 = smov %s986_s18 }
 0x2db   : > { %s1131_s12 = smov %s973_s15  ;;  %21 = sbr.rel (!%p19_p5) target bundleno = 3 (0x3), region = 137 }
 0x2e2   :  { %682 = vsyncpa [#allocation4], 1 }
 0x2e3   :  { %684 = vsyncpa [#allocation4 + $0x1], 1 }

</bundles_post_ra>
